<compile_context>
chip_gen: v7x
topology: tpu7x:2x2x1
jax: 0.10.0
libtpu: 0.0.40
codegen_flags: <defaults>
</compile_context>

<pallas_src>
import jax
import jax.numpy as jnp
from jax.experimental import pallas as pl
from jax.experimental.pallas import tpu as pltpu

_TILE_BYTES_TARGET = 4 * 1024 * 1024          # ~4 MiB per tile
_VMEM_LIMIT_BYTES = 32 * 1024 * 1024          # covers 4x tile (in+out, 2-buf) + headroom
_LANE_CHOICES = (2048, 1024, 512, 256, 128)   # lane-dense last dims (multiples of 128)


def _copy_kernel(x_ref, o_ref):
    # Straight VMEM copy of the current lane-dense tile.
    o_ref[...] = x_ref[...]


def _sublane_pack(dtype) -> int:
    # Sublane packing: 8 rows for 4-byte, 16 for 2-byte, 32 for 1-byte dtypes.
    return {4: 8, 2: 16, 1: 32}.get(jnp.dtype(dtype).itemsize, 8)


def _choose_factorization(total: int, pack: int):
    """Pick a (rows, lanes) split of `total`, preferring clean sublane rows."""
    fallback = None
    for lanes in _LANE_CHOICES:
        if total % lanes:
            continue
        rows = total // lanes
        if rows >= pack and rows % pack == 0:
            return rows, lanes            # widest lanes with unmasked sublane rows
        if fallback is None:
            fallback = (rows, lanes)      # widest lane-dense split available
    return fallback                       # None if total is not a multiple of 128


def identity(x: jax.Array) -> jax.Array:
    """Pallas equivalent of Identity.forward: y = x.

    Identity needs zero bytes of HBM traffic, so the optimal implementation is
    to return the input unchanged (no pallas_call).  Use identity_copy() if a
    physically distinct output buffer is required.
    """
    return x


def identity_copy(x: jax.Array) -> jax.Array:
    """Materialized copy of x via a roofline-rate Pallas tiled copy."""
    total = x.size
    if total == 0:
        return x

    itemsize = jnp.dtype(x.dtype).itemsize
    pack = _sublane_pack(x.dtype)
    cost = pl.CostEstimate(flops=0, transcendentals=0,
                           bytes_accessed=2 * total * itemsize)
    cparams = pltpu.CompilerParams(
        dimension_semantics=("parallel",),
        vmem_limit_bytes=_VMEM_LIMIT_BYTES,
    )

    fact = _choose_factorization(total, pack)
    if fact is None:
        # Ragged element count (not a multiple of 128).
        # TODO(synk): switch to a lane-padded, masked edge tile if ragged
        # inputs ever get large enough for one trailing-dims block to stress VMEM.
        if x.ndim < 3:
            # Whole array as one full-dims block (legal for any shape; small inputs).
            return pl.pallas_call(
                _copy_kernel,
                out_shape=jax.ShapeDtypeStruct(x.shape, x.dtype),
                cost_estimate=cost,
                compiler_params=pltpu.CompilerParams(
                    vmem_limit_bytes=_VMEM_LIMIT_BYTES),
            )(x)
        ndim = x.ndim
        block = (1,) + x.shape[1:]        # last two dims == full array dims -> legal
        spec = pl.BlockSpec(block, lambda i: (i,) + (0,) * (ndim - 1))
        return pl.pallas_call(
            _copy_kernel,
            out_shape=jax.ShapeDtypeStruct(x.shape, x.dtype),
            grid=(x.shape[0],),
            in_specs=[spec],
            out_specs=spec,
            cost_estimate=cost,
            compiler_params=cparams,
        )(x)

    rows, lanes = fact
    # Tile rows: large enough to amortize ~0.35 us/step of pipeline overhead,
    # small enough that in+out double-buffering (4x tile) fits the VMEM budget.
    budget_rows = max(pack, (_TILE_BYTES_TARGET // (lanes * itemsize)) // pack * pack)
    rows_per_tile = min(budget_rows, rows)
    if rows_per_tile == rows and rows >= 2 * pack:
        # Guarantee >= 2 grid steps so both v7x TensorCores can drive HBM.
        rows_per_tile = (-(-((rows + 1) // 2) // pack)) * pack
    grid = (pl.cdiv(rows, rows_per_tile),)

    # Contiguous row-major reshape: metadata-only, no data movement.
    flat = x.reshape(rows, lanes)
    spec = pl.BlockSpec((rows_per_tile, lanes), lambda i: (i, 0))

    y_flat = pl.pallas_call(
        _copy_kernel,
        out_shape=jax.ShapeDtypeStruct((rows, lanes), x.dtype),
        grid=grid,
        in_specs=[spec],
        out_specs=spec,
        cost_estimate=cost,
        compiler_params=cparams,
    )(flat)
    return y_flat.reshape(x.shape)


if __name__ == "__main__":
    key = jax.random.PRNGKey(0)
    x = jax.random.normal(key, (2, 4, 16, 16), dtype=jnp.float32)

    # Identity proper: no kernel, no HBM traffic.
    y = identity(x)
    assert y.shape == x.shape and y.dtype == x.dtype
    assert jnp.array_equal(y, x)

    # Materialized-copy kernel (lane-dense tiled path), f32.
    yc = identity_copy(x)
    jax.block_until_ready(yc)
    assert yc.shape == x.shape and yc.dtype == x.dtype
    assert jnp.array_equal(yc, x)

    # Same path with a 2-byte dtype (exercises dtype-aware sublane rounding).
    xb = x.astype(jnp.bfloat16)
    yb = identity_copy(xb)
    jax.block_until_ready(yb)
    assert yb.shape == xb.shape and yb.dtype == xb.dtype
    assert jnp.array_equal(yb, xb)

    # Ragged element count (not a multiple of 128): leading-axis tiled fallback.
    xr = jax.random.normal(key, (2, 3, 5), dtype=jnp.float32)
    yr = identity_copy(xr)
    jax.block_until_ready(yr)
    assert jnp.array_equal(yr, xr)

    print("KERNEL_OK")
</pallas_src>

<mosaic_0001>
module attributes {stable_mosaic.version = 11 : i64} {
  func.func @_copy_kernel(%arg0: i32, %arg1: memref<8x256xf32, #tpu.memory_space<vmem>>, %arg2: memref<8x256xf32, #tpu.memory_space<vmem>>) attributes {dimension_semantics = [#tpu.dimension_semantics<parallel>], iteration_bounds = array<i64: 1>, scalar_prefetch = 0 : i64, scratch_operands = 0 : i64, tpu.core_type = #tpu.core_type<tc>, window_params = [{transform_indices = @transform_0, window_bounds = array<i64: 8, 256>}, {transform_indices = @transform_1, window_bounds = array<i64: 8, 256>}]} {
    %c0 = arith.constant 0 : index
    %c0_0 = arith.constant 0 : index
    %0 = vector.load %arg1[%c0, %c0_0] : memref<8x256xf32, #tpu.memory_space<vmem>>, vector<8x256xf32>
    %c0_1 = arith.constant 0 : index
    %c0_2 = arith.constant 0 : index
    %1 = vector.load %arg2[%c0_1, %c0_2] : memref<8x256xf32, #tpu.memory_space<vmem>>, vector<8x256xf32>
    tpu.vector_store %arg2[%c0_1, %c0_2], %0 {strides = array<i32>} : memref<8x256xf32, #tpu.memory_space<vmem>>, vector<8x256xf32>,
    return
  }
  func.func @transform_0(%arg0: i32) -> (i32, i32) {
    %c0_i32 = arith.constant 0 : i32
    %c0_i32_0 = arith.constant 0 : i32
    return %arg0, %c0_i32 : i32, i32
  }
  func.func @transform_1(%arg0: i32) -> (i32, i32) {
    %c0_i32 = arith.constant 0 : i32
    %c0_i32_0 = arith.constant 0 : i32
    return %arg0, %c0_i32 : i32, i32
  }
}

</mosaic_0001>

<bundles_post_ra>
// kernel: tpu_custom_call.1
= control target key start
LH: loop header
LB: loop body
LE: loop exit
PB: predicated region body
PF: predicated region fallthrough
CT: control target
= control target key end

     0   :  { %6 = vsyncpa [#allocation3], 0  ;;  %s126_s0 = inlined_call_operand.hbm [shape: f32[8,256], index: 0, kind: input, shape index: {}]   ;;  %s127_s1 = inlined_call_operand.hbm [shape: f32[8,256], index: 1, kind: output, shape index: {}]  }
   0x1   :  { %7 = vsyncpa [#allocation4], 0  ;;  %s90_s6 = smov [#allocation2]   ;;  %s42_s10 = scalar_lea.hbm %s126_s0, 256 }
   0x2   :  { %s14_s7 = sshll.u32 %s90_s6, 4  ;;  %p43_p0 = scmp.ne.s32.totalorder %s126_s0, %s42_s10  ;;  %s15_s7 = int_to_ptr.vmem [resolvable:$true] %s14_s7 }
   0x3   :  { %p46_p1 = scmp.lt.u32.totalorder %s42_s10, %s126_s0 }
   0x5   :  { %p48_p2 = pnand %p46_p1, %p43_p0 }
   0x7   :  { %51 = shalt.err (!%p48_p2)
}
   0x8   :  { %s52_s15 = scalar_lea.vmem %s15_s7, 256  ;;  %p57_p4 = scmp.lt.s32.totalorder %s15_s7, %s15_s7 }
   0x9   :  { %p53_p3 = scmp.ne.s32.totalorder %s15_s7, %s52_s15  ;;  %p58_p5 = scmp.lt.s32.totalorder %s52_s15, %s52_s15 }
   0xb   :  { %p59_p6 = por %p58_p5, %p57_p4 }
   0xd   :  { %p60_p7 = pnand %p59_p6, %p53_p3 }
   0xf   :  { %63 = shalt.err (!%p60_p7)
}
  0x10   :  { %17 = dma.hbm_to_vmem [thread:$0]  %s126_s0, 256, %s15_s7, [#allocation3]  }
  0x11   :  { %86 = dma.done.wait [#allocation3], 256  }
  0x12   :  { %87 = vsyncadd [#allocation3], 4294967040  ;;  %s91_s18 = smov [#allocation5]   ;;  %v21_v0 = vld [vmem:[#allocation2] sm:$0xff]  ;;  %v22_v1 = vld [vmem:[#allocation2 + $0x8] sm:$0xff] }
  0x13   :  { %s31_s19 = sshll.u32 %s91_s18, 4  ;;  %23 = vst [vmem:[#allocation5] sm:$0xff] %v21_v0  ;;  %24 = vst [vmem:[#allocation5 + $0x8] sm:$0xff] %v22_v1  ;;  %s32_s19 = int_to_ptr.vmem [resolvable:$true] %s31_s19 }
  0x14   :  { %s64_s20 = scalar_lea.vmem %s32_s19, 256  ;;  %p69_p9 = scmp.lt.s32.totalorder %s32_s19, %s32_s19 }
  0x15   :  { %p65_p8 = scmp.ne.s32.totalorder %s32_s19, %s64_s20  ;;  %p70_p10 = scmp.lt.s32.totalorder %s64_s20, %s64_s20 }
  0x17   :  { %p71_p11 = por %p70_p10, %p69_p9 }
  0x19   :  { %p72_p12 = pnand %p71_p11, %p65_p8 }
  0x1b   :  { %75 = shalt.err (!%p72_p12)
}
  0x1c   :  { %s76_s0 = scalar_lea.hbm %s127_s1, 256 }
  0x1d   :  { %p77_p13 = scmp.ne.s32.totalorder %s127_s1, %s76_s0  ;;  %p80_p0 = scmp.lt.u32.totalorder %s76_s0, %s127_s1 }
  0x1f   :  { %p82_p1 = pnand %p80_p0, %p77_p13 }
  0x21   :  { %85 = shalt.err (!%p82_p1)
}
  0x22   :  { %34 = dma.vmem_to_hbm [thread:$0]  %s32_s19, 256, %s127_s1, [#allocation4]  }
  0x23   :  { %88 = dma.done.wait [#allocation4], 256  }
  0x24   :  { %89 = vsyncadd [#allocation4], 4294967040 }
  0x25   :  { %38 = vsyncpa [#allocation3], 1 }
  0x26   :  { %39 = vsyncpa [#allocation4], 1 }

</bundles_post_ra>
